<compile_context>
chip_gen: v6e
topology: v6e:2x2x1
jax: 0.10.0
libtpu: 0.0.40
codegen_flags: <defaults>
</compile_context>

<pallas_src>
import functools

import jax
import jax.numpy as jnp
import numpy as np
from jax import lax
from jax.experimental import pallas as pl
from jax.experimental.pallas import tpu as pltpu

EPS = 1e-5
SLOPE = 0.2
LANE = 128
SUBLANE = 8
MAX_SINGLE_ROWS = 2048      # row cap for the single-pass fast path


def _round_up(v, m):
    return (v + m - 1) // m * m


def _leaky(v):
    return jnp.where(v > 0, v, SLOPE * v)


def _vmem_budget_bytes():
    """~75% of physical VMEM (=> ~96 MiB on v5e/v6e, ~48 MiB on v7x)."""
    cap = 64 * 1024 * 1024                      # conservative (v7x-sized) default
    try:
        cap = int(getattr(pltpu.get_tpu_info(), "vmem_capacity_bytes", cap))
    except Exception:
        pass
    return (cap * 3) // 4


def _resident_spec(shape, index_map, single_buffer):
    """BlockSpec for a block whose index never changes: single-buffer if supported."""
    if single_buffer:
        try:
            return pl.BlockSpec(shape, index_map, pipeline_mode=pl.Buffered(1))
        except Exception:
            pass
    return pl.BlockSpec(shape, index_map)


def _call_with_fallback(build_and_run):
    """Try single-buffered resident weights first; retry with default buffering."""
    try:
        return build_and_run(True)
    except Exception:
        return build_and_run(False)


# --------------------------- single-pass kernel ------------------------------

def _resblock_single_kernel(x_ref, w13_ref, w2_ref, p1_ref, p2_ref, o_ref, *,
                            batch, n_pad, has_proj, final_nl, need_mask):
    """Whole batch in one grid step: fc1 -> BN1 -> leaky -> fc2 -> BN2 -> +shortcut."""
    inv_b = 1.0 / batch
    x = x_ref[...]                                    # f32 (rows, fin_p)
    xb = x.astype(jnp.bfloat16)                       # MXU operand only

    if has_proj:                                      # fused fc1 || fc3 MXU pass
        r = jnp.dot(xb, w13_ref[...], preferred_element_type=jnp.float32)
        h_r = r[:, :n_pad]                            # pre-bias fc1
        shortcut = _leaky(r[:, n_pad:] + p2_ref[2:3, :])
    else:
        h_r = jnp.dot(xb, w13_ref[...], preferred_element_type=jnp.float32)
        shortcut = x                                  # identity shortcut stays f32

    if need_mask:                                     # zero-padded batch rows
        rows = lax.broadcasted_iota(jnp.int32, (x.shape[0], 1), 0)
        keep = (rows < batch).astype(jnp.float32)
    else:
        keep = None

    def _bn_scale_shift(v, p_ref):
        # Stats on the pre-bias matmul output (the linear bias cancels under BN).
        vm = v if keep is None else v * keep
        mean = jnp.sum(vm, axis=0, keepdims=True) * inv_b
        d = v - mean
        dm = d if keep is None else d * keep
        var = jnp.sum(dm * dm, axis=0, keepdims=True) * inv_b
        scale = p_ref[0:1, :] * lax.rsqrt(var + EPS)
        shift = p_ref[1:2, :] - mean * scale
        return scale, shift

    sc1, sh1 = _bn_scale_shift(h_r, p1_ref)
    h = _leaky(h_r * sc1 + sh1).astype(jnp.bfloat16)
    y_r = jnp.dot(h, w2_ref[...], preferred_element_type=jnp.float32)
    sc2, sh2 = _bn_scale_shift(y_r, p2_ref)

    out = shortcut + y_r * sc2 + sh2
    if final_nl:
        out = _leaky(out)
    o_ref[...] = out.astype(o_ref.dtype)


# --------------------------- multi-tile kernel -------------------------------

def _resblock_multi_kernel(x_ref, w13_ref, w2_ref, p1_ref, p2_ref, o_ref,
                           s1_ref, s2_ref, *stash_refs,
                           batch, tb, n_tiles, n_pad, has_proj, final_nl,
                           need_mask, stash):
    """3-phase grid (phase outer, batch tile inner):
         phase 0: fc1 (+fc3 shortcut) once per tile, stash, accumulate BN1 stats
         phase 1: apply BN1+leaky, fc2 once per tile, stash, accumulate BN2 stats
         phase 2: apply BN2, add shortcut, optional leaky, lane-dense store
       With stash=False (stash too big for VMEM) phases 1/2 recompute instead."""
    phase = pl.program_id(0)
    t = pl.program_id(1)
    inv_b = 1.0 / batch
    if stash:
        hbuf, ybuf, sbuf = stash_refs

    @pl.when((phase == 0) & (t == 0))
    def _init():
        s1_ref[...] = jnp.zeros_like(s1_ref)
        s2_ref[...] = jnp.zeros_like(s2_ref)

    def _finalize(s_ref, p_ref):
        # (sum, sumsq) -> per-feature (scale, shift); linear biases cancel under BN.
        mean = s_ref[0:1, :] * inv_b
        var = jnp.maximum(s_ref[1:2, :] * inv_b - mean * mean, 0.0)
        scale = p_ref[0:1, :] * lax.rsqrt(var + EPS)
        shift = p_ref[1:2, :] - mean * scale
        s_ref[0:1, :] = scale
        s_ref[1:2, :] = shift

    @pl.when((phase == 1) & (t == 0))
    def _fin_bn1():
        _finalize(s1_ref, p1_ref)

    @pl.when((phase == 2) & (t == 0))
    def _fin_bn2():
        _finalize(s2_ref, p2_ref)

    def _acc(s_ref, v, vm):
        s_ref[0:1, :] += jnp.sum(vm, axis=0, keepdims=True)
        s_ref[1:2, :] += jnp.sum(vm * v, axis=0, keepdims=True)

    def _accumulate(s_ref, v):
        if not need_mask:
            _acc(s_ref, v, v)
            return

        # Only the last batch tile can contain zero-padded rows.
        @pl.when(t == n_tiles - 1)
        def _masked():
            rows = lax.broadcasted_iota(jnp.int32, (tb, 1), 0)
            keep = (rows < (batch - t * tb)).astype(jnp.float32)
            _acc(s_ref, v, v * keep)

        @pl.when(t != n_tiles - 1)
        def _full():
            _acc(s_ref, v, v)

    def _fc1(xb):
        return jnp.dot(xb, w13_ref[:, :n_pad], preferred_element_type=jnp.float32)

    def _bn1_act(h_r):
        return _leaky(h_r * s1_ref[0:1, :] + s1_ref[1:2, :]).astype(jnp.bfloat16)

    def _fc2(h):
        return jnp.dot(h, w2_ref[...], preferred_element_type=jnp.float32)

    @pl.when(phase == 0)
    def _p0():
        x = x_ref[...]
        xb = x.astype(jnp.bfloat16)
        if stash and has_proj:
            r = jnp.dot(xb, w13_ref[...], preferred_element_type=jnp.float32)
            h_r = r[:, :n_pad]
            sbuf[t] = _leaky(r[:, n_pad:] + p2_ref[2:3, :])
        else:
            h_r = _fc1(xb)
            if stash:
                sbuf[t] = x                       # identity shortcut, f32
        if stash:
            hbuf[t] = h_r
        _accumulate(s1_ref, h_r)

    @pl.when(phase == 1)
    def _p1():
        h_r = hbuf[t] if stash else _fc1(x_ref[...].astype(jnp.bfloat16))
        y_r = _fc2(_bn1_act(h_r))
        if stash:
            ybuf[t] = y_r
        _accumulate(s2_ref, y_r)

    @pl.when(phase == 2)
    def _p2():
        if stash:
            y_r = ybuf[t]
            shortcut = sbuf[t]
        else:
            # TODO(synk): spill h_pre/y_pre/shortcut to HBM outputs instead of
            #             recomputing when the VMEM stash does not fit.
            x = x_ref[...]
            xb = x.astype(jnp.bfloat16)
            if has_proj:
                r = jnp.dot(xb, w13_ref[...], preferred_element_type=jnp.float32)
                h_r = r[:, :n_pad]
                shortcut = _leaky(r[:, n_pad:] + p2_ref[2:3, :])
            else:
                h_r = _fc1(xb)
                shortcut = x
            y_r = _fc2(_bn1_act(h_r))
        out = shortcut + y_r * s2_ref[0:1, :] + s2_ref[1:2, :]
        if final_nl:
            out = _leaky(out)
        o_ref[...] = out.astype(o_ref.dtype)


# ------------------------------ host wrappers --------------------------------

def prepare_resblock_params(params):
    """One-time layout prep: transpose, pad to lane multiples, pack, cast to bf16."""
    n_neurons, fin = params["w1"].shape
    fout = params["w2"].shape[0]
    has_proj = "w3" in params

    fin_p = _round_up(fin, LANE)
    n_p = _round_up(n_neurons, LANE)
    fout_p = _round_up(fout, LANE)

    def _pad2(a, rows, cols):
        return jnp.pad(a, ((0, rows - a.shape[0]), (0, cols - a.shape[1])))

    w1t = _pad2(params["w1"].T, fin_p, n_p)
    w2t = _pad2(params["w2"].T, n_p, fout_p).astype(jnp.bfloat16)
    if has_proj:
        w3t = _pad2(params["w3"].T, fin_p, fout_p)
        w13 = jnp.concatenate([w1t, w3t], axis=1).astype(jnp.bfloat16)  # fc1 || fc3
    else:
        w13 = w1t.astype(jnp.bfloat16)

    # Packed per-feature vectors.  fc1/fc2 biases cancel exactly under training-
    # mode BatchNorm (BN subtracts the batch mean), so only gamma/beta (+ the fc3
    # bias) are packed.  Padded columns stay 0 so padded output lanes stay 0.
    p1 = jnp.zeros((SUBLANE, n_p), jnp.float32)
    p1 = p1.at[0, :n_neurons].set(params["g1"]).at[1, :n_neurons].set(params["be1"])
    p2 = jnp.zeros((SUBLANE, fout_p), jnp.float32)
    p2 = p2.at[0, :fout].set(params["g2"]).at[1, :fout].set(params["be2"])
    if has_proj:
        p2 = p2.at[2, :fout].set(params["b3"])

    return {"w13": w13, "w2": w2t, "p1": p1, "p2": p2,
            "fin": fin, "fout": fout, "fin_p": fin_p, "n_p": n_p,
            "fout_p": fout_p, "has_proj": has_proj}


def resblock_forward(x, prep, final_nl=True, out_dtype=None, *,
                     _force_multi=False, _force_tb=None, _force_stash=None):
    """ResBlock.forward(x, final_nl) with training-mode BatchNorm.  x: (batch, Fin)."""
    batch, fin = x.shape
    assert fin == prep["fin"]
    fin_p, n_p, fout_p = prep["fin_p"], prep["n_p"], prep["fout_p"]
    fout, has_proj = prep["fout"], prep["has_proj"]
    out_dtype = x.dtype if out_dtype is None else out_dtype

    budget = _vmem_budget_bytes()
    weight_bytes = ((prep["w13"].size + prep["w2"].size) * 2
                    + (prep["p1"].size + prep["p2"].size) * 4)
    x_f32 = x.astype(jnp.float32)
    b8 = _round_up(batch, SUBLANE)

    # ---------------- single-pass fast path ----------------
    row_bytes = 8 * (fin_p + n_p + 3 * fout_p)       # rough per-row working set
    if (not _force_multi and b8 <= MAX_SINGLE_ROWS
            and weight_bytes + b8 * row_bytes + (2 << 20) <= budget):
        x_p = jnp.pad(x_f32, ((0, b8 - batch), (0, fin_p - fin)))
        kernel = functools.partial(
            _resblock_single_kernel, batch=batch, n_pad=n_p,
            has_proj=has_proj, final_nl=final_nl, need_mask=(b8 != batch))

        def _run(single_buffer):
            return pl.pallas_call(
                kernel,
                out_shape=jax.ShapeDtypeStruct((b8, fout_p), out_dtype),
                grid=(1,),
                in_specs=[
                    pl.BlockSpec((b8, fin_p), lambda i: (0, 0)),
                    _resident_spec(prep["w13"].shape, lambda i: (0, 0), single_buffer),
                    _resident_spec(prep["w2"].shape, lambda i: (0, 0), single_buffer),
                    _resident_spec(prep["p1"].shape, lambda i: (0, 0), single_buffer),
                    _resident_spec(prep["p2"].shape, lambda i: (0, 0), single_buffer),
                ],
                out_specs=pl.BlockSpec((b8, fout_p), lambda i: (0, 0)),
                compiler_params=pltpu.CompilerParams(
                    dimension_semantics=("arbitrary",),
                    vmem_limit_bytes=budget),
            )(x_p, prep["w13"], prep["w2"], prep["p1"], prep["p2"])

        out = _call_with_fallback(_run)
        return out[:batch, :fout]

    # ---------------- multi-tile 3-phase path ----------------
    if _force_tb is not None:
        tb = _round_up(min(_force_tb, b8), SUBLANE)
    else:
        tb_cap = 1024 if budget >= (64 << 20) else 512   # smaller tiles for v7x VMEM
        tb = min(tb_cap, b8)
    b_pad = _round_up(batch, tb)
    n_tiles = b_pad // tb
    need_mask = b_pad != batch

    # Persistent VMEM stash of fc1/fc2 pre-BN activations and the shortcut.
    stash_bytes = 4 * b_pad * (n_p + 2 * fout_p)
    io_bytes = 8 * tb * (fin_p + fout_p) + 12 * tb * (n_p + fout_p)
    stash = weight_bytes * 2 + stash_bytes + io_bytes + (2 << 20) <= budget
    if _force_stash is not None:
        stash = _force_stash

    x_p = jnp.pad(x_f32, ((0, b_pad - batch), (0, fin_p - fin)))
    kernel = functools.partial(
        _resblock_multi_kernel, batch=batch, tb=tb, n_tiles=n_tiles, n_pad=n_p,
        has_proj=has_proj, final_nl=final_nl, need_mask=need_mask, stash=stash)

    if stash:
        # x is only needed in phase 0; pin its block afterwards -> x read from HBM once.
        x_idx = lambda p, t: (jnp.where(p == 0, t, n_tiles - 1), 0)
    else:
        x_idx = lambda p, t: (t, 0)
    # The output block index only advances during phase 2, so each block is flushed
    # to HBM exactly once, right after its phase-2 store (block 0's VMEM buffer is
    # intentionally untouched/unflushed during phases 0-1).
    out_idx = lambda p, t: (jnp.where(p == 2, t, 0), 0)
    const_idx = lambda p, t: (0, 0)

    scratch = [pltpu.VMEM((2, n_p), jnp.float32),       # bn1 sum/sumsq -> scale/shift
               pltpu.VMEM((2, fout_p), jnp.float32)]    # bn2 sum/sumsq -> scale/shift
    if stash:
        scratch += [pltpu.VMEM((n_tiles, tb, n_p), jnp.float32),     # h_pre
                    pltpu.VMEM((n_tiles, tb, fout_p), jnp.float32),  # y_pre
                    pltpu.VMEM((n_tiles, tb, fout_p), jnp.float32)]  # shortcut

    def _run(single_buffer):
        return pl.pallas_call(
            kernel,
            out_shape=jax.ShapeDtypeStruct((b_pad, fout_p), out_dtype),
            grid=(3, n_tiles),
            in_specs=[
                pl.BlockSpec((tb, fin_p), x_idx),
                _resident_spec(prep["w13"].shape, const_idx, single_buffer),
                _resident_spec(prep["w2"].shape, const_idx, single_buffer),
                _resident_spec(prep["p1"].shape, const_idx, single_buffer),
                _resident_spec(prep["p2"].shape, const_idx, single_buffer),
            ],
            out_specs=pl.BlockSpec((tb, fout_p), out_idx),
            scratch_shapes=scratch,
            compiler_params=pltpu.CompilerParams(
                dimension_semantics=("arbitrary", "arbitrary"),
                vmem_limit_bytes=budget),
        )(x_p, prep["w13"], prep["w2"], prep["p1"], prep["p2"])

    out = _call_with_fallback(_run)
    return out[:batch, :fout]


# ----------------------------- test harness ----------------------------------

def _init_linear(key, fan_in, fan_out):
    # mimic PyTorch nn.Linear default init: U(-1/sqrt(fan_in), 1/sqrt(fan_in))
    kw, kb = jax.random.split(key)
    bound = 1.0 / np.sqrt(fan_in)
    w = jax.random.uniform(kw, (fan_out, fan_in), jnp.float32, -bound, bound)
    b = jax.random.uniform(kb, (fan_out,), jnp.float32, -bound, bound)
    return w, b


def init_resblock_params(key, fin, fout, n_neurons):
    k1, k2, k3 = jax.random.split(key, 3)
    w1, b1 = _init_linear(k1, fin, n_neurons)
    w2, b2 = _init_linear(k2, n_neurons, fout)
    params = {
        "w1": w1, "b1": b1,
        "g1": jnp.ones((n_neurons,), jnp.float32),
        "be1": jnp.zeros((n_neurons,), jnp.float32),
        "w2": w2, "b2": b2,
        "g2": jnp.ones((fout,), jnp.float32),
        "be2": jnp.zeros((fout,), jnp.float32),
    }
    if fin != fout:
        w3, b3 = _init_linear(k3, fin, fout)
        params["w3"] = w3
        params["b3"] = b3
    return params


def resblock_reference(x, params, final_nl=True):
    """Pure-JAX f32 reference matching the PyTorch forward (training-mode BN)."""
    fin = x.shape[1]
    fout = params["w2"].shape[0]
    if fin != fout:
        xin = x @ params["w3"].T + params["b3"]
        xin = jnp.where(xin > 0, xin, SLOPE * xin)
    else:
        xin = x
    h = x @ params["w1"].T + params["b1"]
    mu, var = jnp.mean(h, 0), jnp.var(h, 0)
    h = (h - mu) / jnp.sqrt(var + EPS) * params["g1"] + params["be1"]
    h = jnp.where(h > 0, h, SLOPE * h)
    y = h @ params["w2"].T + params["b2"]
    mu2, var2 = jnp.mean(y, 0), jnp.var(y, 0)
    y = (y - mu2) / jnp.sqrt(var2 + EPS) * params["g2"] + params["be2"]
    out = xin + y
    if final_nl:
        out = jnp.where(out > 0, out, SLOPE * out)
    return out


if __name__ == "__main__":
    key = jax.random.PRNGKey(0)
    keys = jax.random.split(key, 8)

    # Case 1: projection shortcut (Fin != Fout), final LeakyReLU, single-pass path.
    B, Fin, Fout, n_neurons = 8, 16, 32, 64
    x1 = jax.random.normal(keys[0], (B, Fin), jnp.float32)
    params1 = init_resblock_params(keys[1], Fin, Fout, n_neurons)
    prep1 = prepare_resblock_params(params1)
    out1 = jax.block_until_ready(resblock_forward(x1, prep1, final_nl=True))
    ref1 = resblock_reference(x1, params1, final_nl=True)
    np.testing.assert_allclose(np.asarray(out1), np.asarray(ref1),
                               rtol=5e-2, atol=5e-2)

    # Case 2: identity shortcut, batch not a sublane multiple (masked BN stats),
    # no final non-linearity; still the single-pass path.
    B2, F2, n2 = 12, 32, 48
    x2 = jax.random.normal(keys[2], (B2, F2), jnp.float32)
    params2 = init_resblock_params(keys[3], F2, F2, n2)
    prep2 = prepare_resblock_params(params2)
    out2 = jax.block_until_ready(resblock_forward(x2, prep2, final_nl=False))
    ref2 = resblock_reference(x2, params2, final_nl=False)
    np.testing.assert_allclose(np.asarray(out2), np.asarray(ref2),
                               rtol=5e-2, atol=5e-2)

    # Case 3: forced multi-tile path with VMEM stash (identity shortcut, 3 tiles).
    B3, F3, n3 = 24, 32, 48
    x3 = jax.random.normal(keys[4], (B3, F3), jnp.float32)
    params3 = init_resblock_params(keys[5], F3, F3, n3)
    prep3 = prepare_resblock_params(params3)
    out3 = jax.block_until_ready(resblock_forward(
        x3, prep3, final_nl=True, _force_multi=True, _force_tb=8, _force_stash=True))
    ref3 = resblock_reference(x3, params3, final_nl=True)
    np.testing.assert_allclose(np.asarray(out3), np.asarray(ref3),
                               rtol=5e-2, atol=5e-2)

    # Case 4: forced multi-tile recompute fallback (projection shortcut, ragged
    # batch so only the last tile masks padded rows).
    B4, Fin4, Fout4, n4 = 20, 16, 32, 64
    x4 = jax.random.normal(keys[6], (B4, Fin4), jnp.float32)
    params4 = init_resblock_params(keys[7], Fin4, Fout4, n4)
    prep4 = prepare_resblock_params(params4)
    out4 = jax.block_until_ready(resblock_forward(
        x4, prep4, final_nl=True, _force_multi=True, _force_tb=8, _force_stash=False))
    ref4 = resblock_reference(x4, params4, final_nl=True)
    np.testing.assert_allclose(np.asarray(out4), np.asarray(ref4),
                               rtol=5e-2, atol=5e-2)

    print("KERNEL_OK")
</pallas_src>

<mosaic_0001>
module attributes {stable_mosaic.version = 11 : i64} {
  func.func @_resblock_single_kernel(%arg0: i32, %arg1: memref<8x128xf32, #tpu.memory_space<vmem>>, %arg2: memref<128x256xbf16, #tpu.memory_space<vmem>>, %arg3: memref<128x128xbf16, #tpu.memory_space<vmem>>, %arg4: memref<8x128xf32, #tpu.memory_space<vmem>>, %arg5: memref<8x128xf32, #tpu.memory_space<vmem>>, %arg6: memref<8x128xf32, #tpu.memory_space<vmem>>) attributes {dimension_semantics = [#tpu.dimension_semantics<arbitrary>], iteration_bounds = array<i64: 1>, scalar_prefetch = 0 : i64, scratch_operands = 0 : i64, tpu.core_type = #tpu.core_type<tc>, window_params = [{pipeline_mode = #tpu.pipeline_mode<synchronous>, transform_indices = @transform_0, window_bounds = array<i64: 8, 128>}, {pipeline_mode = #tpu.pipeline_mode<synchronous>, transform_indices = @transform_1, window_bounds = array<i64: 128, 256>}, {pipeline_mode = #tpu.pipeline_mode<synchronous>, transform_indices = @transform_2, window_bounds = array<i64: 128, 128>}, {pipeline_mode = #tpu.pipeline_mode<synchronous>, transform_indices = @transform_3, window_bounds = array<i64: 8, 128>}, {pipeline_mode = #tpu.pipeline_mode<synchronous>, transform_indices = @transform_4, window_bounds = array<i64: 8, 128>}, {pipeline_mode = #tpu.pipeline_mode<synchronous>, transform_indices = @transform_5, window_bounds = array<i64: 8, 128>}]} {
    %c0 = arith.constant 0 : index
    %c0_0 = arith.constant 0 : index
    %0 = vector.load %arg1[%c0, %c0_0] : memref<8x128xf32, #tpu.memory_space<vmem>>, vector<8x128xf32>
    %1 = arith.truncf %0 : vector<8x128xf32> to vector<8x128xbf16>
    %c0_1 = arith.constant 0 : index
    %c0_2 = arith.constant 0 : index
    %2 = vector.load %arg2[%c0_1, %c0_2] : memref<128x256xbf16, #tpu.memory_space<vmem>>, vector<128x256xbf16>
    %cst = arith.constant dense<0.000000e+00> : vector<8x256xf32>
    %3 = tpu.matmul %1, %2, %cst {dimension_numbers = #tpu.dot_dimension_numbers<[1], [0], [0], [1], [0, 0, 1, 1], [], []>} : vector<8x128xbf16>, vector<128x256xbf16>, vector<8x256xf32> -> vector<8x256xf32>
    %4 = vector.extract_strided_slice %3 {offsets = [0, 0], sizes = [8, 128], strides = [1, 1]} : vector<8x256xf32> to vector<8x128xf32>
    %5 = vector.extract_strided_slice %3 {offsets = [0, 128], sizes = [8, 128], strides = [1, 1]} : vector<8x256xf32> to vector<8x128xf32>
    %c2 = arith.constant 2 : index
    %c0_3 = arith.constant 0 : index
    %6 = vector.load %arg5[%c2, %c0_3] : memref<8x128xf32, #tpu.memory_space<vmem>>, vector<1x128xf32>
    %7 = vector.broadcast %6 : vector<1x128xf32> to vector<8x128xf32>
    %8 = arith.addf %5, %7 : vector<8x128xf32>
    %cst_4 = arith.constant 0.000000e+00 : f32
    %9 = vector.broadcast %cst_4 : f32 to vector<8x128xf32>
    %10 = arith.cmpf ogt, %8, %9 : vector<8x128xf32>
    %cst_5 = arith.constant 2.000000e-01 : f32
    %11 = vector.broadcast %cst_5 : f32 to vector<8x128xf32>
    %12 = arith.mulf %11, %8 : vector<8x128xf32>
    %13 = arith.select %10, %8, %12 : vector<8x128xi1>, vector<8x128xf32>
    %cst_6 = arith.constant dense<0.000000e+00> : vector<128xf32>
    %14 = vector.multi_reduction <add>, %4, %cst_6 [0] : vector<8x128xf32> to vector<128xf32>
    %15 = vector.shape_cast %14 : vector<128xf32> to vector<1x128xf32>
    %cst_7 = arith.constant 1.250000e-01 : f32
    %16 = vector.broadcast %cst_7 : f32 to vector<1x128xf32>
    %17 = arith.mulf %15, %16 : vector<1x128xf32>
    %18 = vector.broadcast %17 : vector<1x128xf32> to vector<8x128xf32>
    %19 = arith.subf %4, %18 : vector<8x128xf32>
    %20 = arith.mulf %19, %19 : vector<8x128xf32>
    %cst_8 = arith.constant dense<0.000000e+00> : vector<128xf32>
    %21 = vector.multi_reduction <add>, %20, %cst_8 [0] : vector<8x128xf32> to vector<128xf32>
    %22 = vector.shape_cast %21 : vector<128xf32> to vector<1x128xf32>
    %cst_9 = arith.constant 1.250000e-01 : f32
    %23 = vector.broadcast %cst_9 : f32 to vector<1x128xf32>
    %24 = arith.mulf %22, %23 : vector<1x128xf32>
    %c0_10 = arith.constant 0 : index
    %c0_11 = arith.constant 0 : index
    %25 = vector.load %arg4[%c0_10, %c0_11] : memref<8x128xf32, #tpu.memory_space<vmem>>, vector<1x128xf32>
    %cst_12 = arith.constant 9.99999974E-6 : f32
    %26 = vector.broadcast %cst_12 : f32 to vector<1x128xf32>
    %27 = arith.addf %24, %26 : vector<1x128xf32>
    %28 = math.rsqrt %27 : vector<1x128xf32>
    %29 = arith.mulf %25, %28 : vector<1x128xf32>
    %c1 = arith.constant 1 : index
    %c0_13 = arith.constant 0 : index
    %30 = vector.load %arg4[%c1, %c0_13] : memref<8x128xf32, #tpu.memory_space<vmem>>, vector<1x128xf32>
    %31 = arith.mulf %17, %29 : vector<1x128xf32>
    %32 = arith.subf %30, %31 : vector<1x128xf32>
    %33 = vector.broadcast %29 : vector<1x128xf32> to vector<8x128xf32>
    %34 = arith.mulf %4, %33 : vector<8x128xf32>
    %35 = vector.broadcast %32 : vector<1x128xf32> to vector<8x128xf32>
    %36 = arith.addf %34, %35 : vector<8x128xf32>
    %cst_14 = arith.constant 0.000000e+00 : f32
    %37 = vector.broadcast %cst_14 : f32 to vector<8x128xf32>
    %38 = arith.cmpf ogt, %36, %37 : vector<8x128xf32>
    %cst_15 = arith.constant 2.000000e-01 : f32
    %39 = vector.broadcast %cst_15 : f32 to vector<8x128xf32>
    %40 = arith.mulf %39, %36 : vector<8x128xf32>
    %41 = arith.select %38, %36, %40 : vector<8x128xi1>, vector<8x128xf32>
    %42 = arith.truncf %41 : vector<8x128xf32> to vector<8x128xbf16>
    %c0_16 = arith.constant 0 : index
    %c0_17 = arith.constant 0 : index
    %43 = vector.load %arg3[%c0_16, %c0_17] : memref<128x128xbf16, #tpu.memory_space<vmem>>, vector<128x128xbf16>
    %cst_18 = arith.constant dense<0.000000e+00> : vector<8x128xf32>
    %44 = tpu.matmul %42, %43, %cst_18 {dimension_numbers = #tpu.dot_dimension_numbers<[1], [0], [0], [1], [0, 0, 1, 1], [], []>} : vector<8x128xbf16>, vector<128x128xbf16>, vector<8x128xf32> -> vector<8x128xf32>
    %cst_19 = arith.constant dense<0.000000e+00> : vector<128xf32>
    %45 = vector.multi_reduction <add>, %44, %cst_19 [0] : vector<8x128xf32> to vector<128xf32>
    %46 = vector.shape_cast %45 : vector<128xf32> to vector<1x128xf32>
    %cst_20 = arith.constant 1.250000e-01 : f32
    %47 = vector.broadcast %cst_20 : f32 to vector<1x128xf32>
    %48 = arith.mulf %46, %47 : vector<1x128xf32>
    %49 = vector.broadcast %48 : vector<1x128xf32> to vector<8x128xf32>
    %50 = arith.subf %44, %49 : vector<8x128xf32>
    %51 = arith.mulf %50, %50 : vector<8x128xf32>
    %cst_21 = arith.constant dense<0.000000e+00> : vector<128xf32>
    %52 = vector.multi_reduction <add>, %51, %cst_21 [0] : vector<8x128xf32> to vector<128xf32>
    %53 = vector.shape_cast %52 : vector<128xf32> to vector<1x128xf32>
    %cst_22 = arith.constant 1.250000e-01 : f32
    %54 = vector.broadcast %cst_22 : f32 to vector<1x128xf32>
    %55 = arith.mulf %53, %54 : vector<1x128xf32>
    %c0_23 = arith.constant 0 : index
    %c0_24 = arith.constant 0 : index
    %56 = vector.load %arg5[%c0_23, %c0_24] : memref<8x128xf32, #tpu.memory_space<vmem>>, vector<1x128xf32>
    %cst_25 = arith.constant 9.99999974E-6 : f32
    %57 = vector.broadcast %cst_25 : f32 to vector<1x128xf32>
    %58 = arith.addf %55, %57 : vector<1x128xf32>
    %59 = math.rsqrt %58 : vector<1x128xf32>
    %60 = arith.mulf %56, %59 : vector<1x128xf32>
    %c1_26 = arith.constant 1 : index
    %c0_27 = arith.constant 0 : index
    %61 = vector.load %arg5[%c1_26, %c0_27] : memref<8x128xf32, #tpu.memory_space<vmem>>, vector<1x128xf32>
    %62 = arith.mulf %48, %60 : vector<1x128xf32>
    %63 = arith.subf %61, %62 : vector<1x128xf32>
    %64 = vector.broadcast %60 : vector<1x128xf32> to vector<8x128xf32>
    %65 = arith.mulf %44, %64 : vector<8x128xf32>
    %66 = arith.addf %13, %65 : vector<8x128xf32>
    %67 = vector.broadcast %63 : vector<1x128xf32> to vector<8x128xf32>
    %68 = arith.addf %66, %67 : vector<8x128xf32>
    %cst_28 = arith.constant 0.000000e+00 : f32
    %69 = vector.broadcast %cst_28 : f32 to vector<8x128xf32>
    %70 = arith.cmpf ogt, %68, %69 : vector<8x128xf32>
    %cst_29 = arith.constant 2.000000e-01 : f32
    %71 = vector.broadcast %cst_29 : f32 to vector<8x128xf32>
    %72 = arith.mulf %71, %68 : vector<8x128xf32>
    %73 = arith.select %70, %68, %72 : vector<8x128xi1>, vector<8x128xf32>
    %c0_30 = arith.constant 0 : index
    %c0_31 = arith.constant 0 : index
    %74 = vector.load %arg6[%c0_30, %c0_31] : memref<8x128xf32, #tpu.memory_space<vmem>>, vector<8x128xf32>
    tpu.vector_store %arg6[%c0_30, %c0_31], %73 {strides = array<i32>} : memref<8x128xf32, #tpu.memory_space<vmem>>, vector<8x128xf32>,
    return
  }
  func.func @transform_0(%arg0: i32) -> (i32, i32) {
    %c0_i32 = arith.constant 0 : i32
    %c0_i32_0 = arith.constant 0 : i32
    %c0_i32_1 = arith.constant 0 : i32
    return %c0_i32, %c0_i32_0 : i32, i32
  }
  func.func @transform_1(%arg0: i32) -> (i32, i32) {
    %c0_i32 = arith.constant 0 : i32
    %c0_i32_0 = arith.constant 0 : i32
    %c0_i32_1 = arith.constant 0 : i32
    return %c0_i32, %c0_i32_0 : i32, i32
  }
  func.func @transform_2(%arg0: i32) -> (i32, i32) {
    %c0_i32 = arith.constant 0 : i32
    %c0_i32_0 = arith.constant 0 : i32
    %c0_i32_1 = arith.constant 0 : i32
    return %c0_i32, %c0_i32_0 : i32, i32
  }
  func.func @transform_3(%arg0: i32) -> (i32, i32) {
    %c0_i32 = arith.constant 0 : i32
    %c0_i32_0 = arith.constant 0 : i32
    %c0_i32_1 = arith.constant 0 : i32
    return %c0_i32, %c0_i32_0 : i32, i32
  }
  func.func @transform_4(%arg0: i32) -> (i32, i32) {
    %c0_i32 = arith.constant 0 : i32
    %c0_i32_0 = arith.constant 0 : i32
    %c0_i32_1 = arith.constant 0 : i32
    return %c0_i32, %c0_i32_0 : i32, i32
  }
  func.func @transform_5(%arg0: i32) -> (i32, i32) {
    %c0_i32 = arith.constant 0 : i32
    %c0_i32_0 = arith.constant 0 : i32
    %c0_i32_1 = arith.constant 0 : i32
    return %c0_i32, %c0_i32_0 : i32, i32
  }
}

module attributes {stable_mosaic.version = 11 : i64} {
  func.func @_resblock_single_kernel(%arg0: i32, %arg1: memref<8x128xf32, #tpu.memory_space<vmem>>, %arg2: memref<128x256xbf16, #tpu.memory_space<vmem>>, %arg3: memref<128x128xbf16, #tpu.memory_space<vmem>>, %arg4: memref<8x128xf32, #tpu.memory_space<vmem>>, %arg5: memref<8x128xf32, #tpu.memory_space<vmem>>, %arg6: memref<8x128xf32, #tpu.memory_space<vmem>>) attributes {dimension_semantics = [#tpu.dimension_semantics<arbitrary>], iteration_bounds = array<i64: 1>, scalar_prefetch = 0 : i64, scratch_operands = 0 : i64, tpu.core_type = #tpu.core_type<tc>, window_params = [{pipeline_mode = #tpu.pipeline_mode<synchronous>, transform_indices = @transform_0, window_bounds = array<i64: 8, 128>}, {pipeline_mode = #tpu.pipeline_mode<synchronous>, transform_indices = @transform_1, window_bounds = array<i64: 128, 256>}, {pipeline_mode = #tpu.pipeline_mode<synchronous>, transform_indices = @transform_2, window_bounds = array<i64: 128, 128>}, {pipeline_mode = #tpu.pipeline_mode<synchronous>, transform_indices = @transform_3, window_bounds = array<i64: 8, 128>}, {pipeline_mode = #tpu.pipeline_mode<synchronous>, transform_indices = @transform_4, window_bounds = array<i64: 8, 128>}, {pipeline_mode = #tpu.pipeline_mode<synchronous>, transform_indices = @transform_5, window_bounds = array<i64: 8, 128>}]} {
    %c0 = arith.constant 0 : index
    %c0_0 = arith.constant 0 : index
    %0 = vector.load %arg1[%c0, %c0_0] : memref<8x128xf32, #tpu.memory_space<vmem>>, vector<8x128xf32>
    %1 = arith.truncf %0 : vector<8x128xf32> to vector<8x128xbf16>
    %c0_1 = arith.constant 0 : index
    %c0_2 = arith.constant 0 : index
    %2 = vector.load %arg2[%c0_1, %c0_2] : memref<128x256xbf16, #tpu.memory_space<vmem>>, vector<128x256xbf16>
    %cst = arith.constant dense<0.000000e+00> : vector<8x256xf32>
    %3 = tpu.matmul %1, %2, %cst {dimension_numbers = #tpu.dot_dimension_numbers<[1], [0], [0], [1], [0, 0, 1, 1], [], []>} : vector<8x128xbf16>, vector<128x256xbf16>, vector<8x256xf32> -> vector<8x256xf32>
    %4 = vector.extract_strided_slice %3 {offsets = [0, 0], sizes = [8, 128], strides = [1, 1]} : vector<8x256xf32> to vector<8x128xf32>
    %5 = vector.extract_strided_slice %3 {offsets = [0, 128], sizes = [8, 128], strides = [1, 1]} : vector<8x256xf32> to vector<8x128xf32>
    %c2 = arith.constant 2 : index
    %c0_3 = arith.constant 0 : index
    %6 = vector.load %arg5[%c2, %c0_3] : memref<8x128xf32, #tpu.memory_space<vmem>>, vector<1x128xf32>
    %7 = vector.broadcast %6 : vector<1x128xf32> to vector<8x128xf32>
    %8 = arith.addf %5, %7 : vector<8x128xf32>
    %cst_4 = arith.constant 0.000000e+00 : f32
    %9 = vector.broadcast %cst_4 : f32 to vector<8x128xf32>
    %10 = arith.cmpf ogt, %8, %9 : vector<8x128xf32>
    %cst_5 = arith.constant 2.000000e-01 : f32
    %11 = vector.broadcast %cst_5 : f32 to vector<8x128xf32>
    %12 = arith.mulf %11, %8 : vector<8x128xf32>
    %13 = arith.select %10, %8, %12 : vector<8x128xi1>, vector<8x128xf32>
    %cst_6 = arith.constant dense<0.000000e+00> : vector<128xf32>
    %14 = vector.multi_reduction <add>, %4, %cst_6 [0] : vector<8x128xf32> to vector<128xf32>
    %15 = vector.shape_cast %14 : vector<128xf32> to vector<1x128xf32>
    %cst_7 = arith.constant 1.250000e-01 : f32
    %16 = vector.broadcast %cst_7 : f32 to vector<1x128xf32>
    %17 = arith.mulf %15, %16 : vector<1x128xf32>
    %18 = vector.broadcast %17 : vector<1x128xf32> to vector<8x128xf32>
    %19 = arith.subf %4, %18 : vector<8x128xf32>
    %20 = arith.mulf %19, %19 : vector<8x128xf32>
    %cst_8 = arith.constant dense<0.000000e+00> : vector<128xf32>
    %21 = vector.multi_reduction <add>, %20, %cst_8 [0] : vector<8x128xf32> to vector<128xf32>
    %22 = vector.shape_cast %21 : vector<128xf32> to vector<1x128xf32>
    %cst_9 = arith.constant 1.250000e-01 : f32
    %23 = vector.broadcast %cst_9 : f32 to vector<1x128xf32>
    %24 = arith.mulf %22, %23 : vector<1x128xf32>
    %c0_10 = arith.constant 0 : index
    %c0_11 = arith.constant 0 : index
    %25 = vector.load %arg4[%c0_10, %c0_11] : memref<8x128xf32, #tpu.memory_space<vmem>>, vector<1x128xf32>
    %cst_12 = arith.constant 9.99999974E-6 : f32
    %26 = vector.broadcast %cst_12 : f32 to vector<1x128xf32>
    %27 = arith.addf %24, %26 : vector<1x128xf32>
    %28 = math.rsqrt %27 : vector<1x128xf32>
    %29 = arith.mulf %25, %28 : vector<1x128xf32>
    %c1 = arith.constant 1 : index
    %c0_13 = arith.constant 0 : index
    %30 = vector.load %arg4[%c1, %c0_13] : memref<8x128xf32, #tpu.memory_space<vmem>>, vector<1x128xf32>
    %31 = arith.mulf %17, %29 : vector<1x128xf32>
    %32 = arith.subf %30, %31 : vector<1x128xf32>
    %33 = vector.broadcast %29 : vector<1x128xf32> to vector<8x128xf32>
    %34 = arith.mulf %4, %33 : vector<8x128xf32>
    %35 = vector.broadcast %32 : vector<1x128xf32> to vector<8x128xf32>
    %36 = arith.addf %34, %35 : vector<8x128xf32>
    %cst_14 = arith.constant 0.000000e+00 : f32
    %37 = vector.broadcast %cst_14 : f32 to vector<8x128xf32>
    %38 = arith.cmpf ogt, %36, %37 : vector<8x128xf32>
    %cst_15 = arith.constant 2.000000e-01 : f32
    %39 = vector.broadcast %cst_15 : f32 to vector<8x128xf32>
    %40 = arith.mulf %39, %36 : vector<8x128xf32>
    %41 = arith.select %38, %36, %40 : vector<8x128xi1>, vector<8x128xf32>
    %42 = arith.truncf %41 : vector<8x128xf32> to vector<8x128xbf16>
    %c0_16 = arith.constant 0 : index
    %c0_17 = arith.constant 0 : index
    %43 = vector.load %arg3[%c0_16, %c0_17] : memref<128x128xbf16, #tpu.memory_space<vmem>>, vector<128x128xbf16>
    %cst_18 = arith.constant dense<0.000000e+00> : vector<8x128xf32>
    %44 = tpu.matmul %42, %43, %cst_18 {dimension_numbers = #tpu.dot_dimension_numbers<[1], [0], [0], [1], [0, 0, 1, 1], [], []>} : vector<8x128xbf16>, vector<128x128xbf16>, vector<8x128xf32> -> vector<8x128xf32>
    %cst_19 = arith.constant dense<0.000000e+00> : vector<128xf32>
    %45 = vector.multi_reduction <add>, %44, %cst_19 [0] : vector<8x128xf32> to vector<128xf32>
    %46 = vector.shape_cast %45 : vector<128xf32> to vector<1x128xf32>
    %cst_20 = arith.constant 1.250000e-01 : f32
    %47 = vector.broadcast %cst_20 : f32 to vector<1x128xf32>
    %48 = arith.mulf %46, %47 : vector<1x128xf32>
    %49 = vector.broadcast %48 : vector<1x128xf32> to vector<8x128xf32>
    %50 = arith.subf %44, %49 : vector<8x128xf32>
    %51 = arith.mulf %50, %50 : vector<8x128xf32>
    %cst_21 = arith.constant dense<0.000000e+00> : vector<128xf32>
    %52 = vector.multi_reduction <add>, %51, %cst_21 [0] : vector<8x128xf32> to vector<128xf32>
    %53 = vector.shape_cast %52 : vector<128xf32> to vector<1x128xf32>
    %cst_22 = arith.constant 1.250000e-01 : f32
    %54 = vector.broadcast %cst_22 : f32 to vector<1x128xf32>
    %55 = arith.mulf %53, %54 : vector<1x128xf32>
    %c0_23 = arith.constant 0 : index
    %c0_24 = arith.constant 0 : index
    %56 = vector.load %arg5[%c0_23, %c0_24] : memref<8x128xf32, #tpu.memory_space<vmem>>, vector<1x128xf32>
    %cst_25 = arith.constant 9.99999974E-6 : f32
    %57 = vector.broadcast %cst_25 : f32 to vector<1x128xf32>
    %58 = arith.addf %55, %57 : vector<1x128xf32>
    %59 = math.rsqrt %58 : vector<1x128xf32>
    %60 = arith.mulf %56, %59 : vector<1x128xf32>
    %c1_26 = arith.constant 1 : index
    %c0_27 = arith.constant 0 : index
    %61 = vector.load %arg5[%c1_26, %c0_27] : memref<8x128xf32, #tpu.memory_space<vmem>>, vector<1x128xf32>
    %62 = arith.mulf %48, %60 : vector<1x128xf32>
    %63 = arith.subf %61, %62 : vector<1x128xf32>
    %64 = vector.broadcast %60 : vector<1x128xf32> to vector<8x128xf32>
    %65 = arith.mulf %44, %64 : vector<8x128xf32>
    %66 = arith.addf %13, %65 : vector<8x128xf32>
    %67 = vector.broadcast %63 : vector<1x128xf32> to vector<8x128xf32>
    %68 = arith.addf %66, %67 : vector<8x128xf32>
    %cst_28 = arith.constant 0.000000e+00 : f32
    %69 = vector.broadcast %cst_28 : f32 to vector<8x128xf32>
    %70 = arith.cmpf ogt, %68, %69 : vector<8x128xf32>
    %cst_29 = arith.constant 2.000000e-01 : f32
    %71 = vector.broadcast %cst_29 : f32 to vector<8x128xf32>
    %72 = arith.mulf %71, %68 : vector<8x128xf32>
    %73 = arith.select %70, %68, %72 : vector<8x128xi1>, vector<8x128xf32>
    %c0_30 = arith.constant 0 : index
    %c0_31 = arith.constant 0 : index
    %74 = vector.load %arg6[%c0_30, %c0_31] : memref<8x128xf32, #tpu.memory_space<vmem>>, vector<8x128xf32>
    tpu.vector_store %arg6[%c0_30, %c0_31], %73 {strides = array<i32>} : memref<8x128xf32, #tpu.memory_space<vmem>>, vector<8x128xf32>,
    return
  }
  func.func @transform_0(%arg0: i32) -> (i32, i32) {
    %c0_i32 = arith.constant 0 : i32
    %c0_i32_0 = arith.constant 0 : i32
    %c0_i32_1 = arith.constant 0 : i32
    return %c0_i32, %c0_i32_0 : i32, i32
  }
  func.func @transform_1(%arg0: i32) -> (i32, i32) {
    %c0_i32 = arith.constant 0 : i32
    %c0_i32_0 = arith.constant 0 : i32
    %c0_i32_1 = arith.constant 0 : i32
    return %c0_i32, %c0_i32_0 : i32, i32
  }
  func.func @transform_2(%arg0: i32) -> (i32, i32) {
    %c0_i32 = arith.constant 0 : i32
    %c0_i32_0 = arith.constant 0 : i32
    %c0_i32_1 = arith.constant 0 : i32
    return %c0_i32, %c0_i32_0 : i32, i32
  }
  func.func @transform_3(%arg0: i32) -> (i32, i32) {
    %c0_i32 = arith.constant 0 : i32
    %c0_i32_0 = arith.constant 0 : i32
    %c0_i32_1 = arith.constant 0 : i32
    return %c0_i32, %c0_i32_0 : i32, i32
  }
  func.func @transform_4(%arg0: i32) -> (i32, i32) {
    %c0_i32 = arith.constant 0 : i32
    %c0_i32_0 = arith.constant 0 : i32
    %c0_i32_1 = arith.constant 0 : i32
    return %c0_i32, %c0_i32_0 : i32, i32
  }
  func.func @transform_5(%arg0: i32) -> (i32, i32) {
    %c0_i32 = arith.constant 0 : i32
    %c0_i32_0 = arith.constant 0 : i32
    %c0_i32_1 = arith.constant 0 : i32
    return %c0_i32, %c0_i32_0 : i32, i32
  }
}

</mosaic_0001>

<bundles_post_ra>
// kernel: tpu_custom_call.1
= control target key start
LH: loop header
LB: loop body
LE: loop exit
PB: predicated region body
PF: predicated region fallthrough
CT: control target
= control target key end

     0   :  { %10 = vsyncpa [#allocation3], 0  ;;  %s720_s0 = inlined_call_operand.hbm [shape: f32[8,128], index: 0, kind: input, shape index: {}]   ;;  %s721_s1 = inlined_call_operand.hbm [shape: bf16[128,256], index: 1, kind: input, shape index: {}]   ;;  %s722_s2 = inlined_call_operand.hbm [shape: bf16[128,128], index: 2, kind: input, shape index: {}]   ;;  %s723_s3 = inlined_call_operand.hbm [shape: f32[8,128], index: 3, kind: input, shape index: {}]   ;;  %s724_s4 = inlined_call_operand.hbm [shape: f32[8,128], index: 4, kind: input, shape index: {}]   ;;  %s725_s5 = inlined_call_operand.hbm [shape: f32[8,128], index: 5, kind: output, shape index: {}]  }
   0x1   :  { %11 = vsyncpa [#allocation6], 0 }
   0x2   :  { %12 = vsyncpa [#allocation9], 0 }
   0x3   :  { %13 = vsyncpa [#allocation4], 0  ;;  %s659_s18 = smov [#allocation5]  }
   0x4   :  { %s29_s19 = sshll.u32 %s659_s18, 4  ;;  %s30_s19 = int_to_ptr.vmem [resolvable:$true] %s29_s19 }
   0x5   :  { %s539_s20 = scalar_lea.vmem %s30_s19, 2048  ;;  %p544_p1 = scmp.lt.s32.totalorder %s30_s19, %s30_s19 }
   0x6   :  { %p540_p0 = scmp.ne.s32.totalorder %s30_s19, %s539_s20  ;;  %p545_p2 = scmp.lt.s32.totalorder %s539_s20, %s539_s20 }
   0x8   :  { %p546_p3 = por %p545_p2, %p544_p1 }
   0xa   :  { %p547_p4 = pnand %p546_p3, %p540_p0 }
   0xc   :  { %550 = shalt.err (!%p547_p4)
}
   0xd   :  { %s660_s21 = smov 128   ;;  %s661_s22 = smov 8  }
   0xe   :  { %35 = dma.hbm_to_vmem [thread:$0]  %s721_s1, 2048, %s30_s19, [#allocation6], %s660_s21, %s660_s21, %s661_s22  }
   0xf   :  { %s662_s25 = smov [#allocation8]   ;;  %s663_s27 = smov [#allocation2]  }
  0x10   :  { %s54_s26 = sshll.u32 %s662_s25, 4  ;;  %s20_s28 = sshll.u32 %s663_s27, 4  ;;  %s55_s26 = int_to_ptr.vmem [resolvable:$true] %s54_s26  ;;  %s21_s28 = int_to_ptr.vmem [resolvable:$true] %s20_s28 }
  0x11   :  { %s559_s29 = scalar_lea.vmem %s55_s26, 128  ;;  %p564_p6 = scmp.lt.s32.totalorder %s55_s26, %s55_s26 }
  0x12   :  { %p560_p5 = scmp.ne.s32.totalorder %s55_s26, %s559_s29  ;;  %p565_p7 = scmp.lt.s32.totalorder %s559_s29, %s559_s29 }
  0x14   :  { %p566_p8 = por %p565_p7, %p564_p6 }
  0x16   :  { %p567_p9 = pnand %p566_p8, %p560_p5 }
  0x18   :  { %570 = shalt.err (!%p567_p9)
}
  0x19   :  { %57 = dma.hbm_to_vmem [thread:$0]  %s723_s3, 128, %s55_s26, [#allocation9]  }
  0x1a   :  { %s579_s7 = scalar_lea.vmem %s21_s28, 128  ;;  %p584_p11 = scmp.lt.s32.totalorder %s21_s28, %s21_s28 }
  0x1b   :  { %p580_p10 = scmp.ne.s32.totalorder %s21_s28, %s579_s7  ;;  %p585_p12 = scmp.lt.s32.totalorder %s579_s7, %s579_s7 }
  0x1d   :  { %p586_p13 = por %p585_p12, %p584_p11 }
  0x1f   :  { %p587_p0 = pnand %p586_p13, %p580_p10 }
  0x21   :  { %590 = shalt.err (!%p587_p0)
}
  0x22   :  { %23 = dma.hbm_to_vmem [thread:$0]  %s720_s0, 128, %s21_s28, [#allocation3]  }
  0x23   :  { %s664_s9 = smov [#allocation7]  }
  0x24   :  { %s41_s10 = sshll.u32 %s664_s9, 4  ;;  %s42_s10 = int_to_ptr.vmem [resolvable:$true] %s41_s10 }
  0x25   :  { %s599_s11 = scalar_lea.vmem %s42_s10, 1024  ;;  %p604_p2 = scmp.lt.s32.totalorder %s42_s10, %s42_s10 }
  0x26   :  { %p600_p1 = scmp.ne.s32.totalorder %s42_s10, %s599_s11  ;;  %p605_p3 = scmp.lt.s32.totalorder %s599_s11, %s599_s11 }
  0x28   :  { %p606_p4 = por %p605_p3, %p604_p2 }
  0x2a   :  { %p607_p5 = pnand %p606_p4, %p600_p1 }
  0x2c   :  { %610 = shalt.err (!%p607_p5)
}
  0x2d   :  { %s665_s3 = smov 64   ;;  %s666_s12 = smov 4  }
  0x2e   :  { %47 = dma.hbm_to_vmem [thread:$0]  %s722_s2, 1024, %s42_s10, [#allocation6], %s665_s3, %s665_s3, %s666_s12  }
  0x2f   :  { %s667_s15 = smov [#allocation10]  }
  0x30   :  { %s64_s16 = sshll.u32 %s667_s15, 4  ;;  %s65_s16 = int_to_ptr.vmem [resolvable:$true] %s64_s16 }
  0x31   :  { %s619_s0 = scalar_lea.vmem %s65_s16, 128  ;;  %p624_p7 = scmp.lt.s32.totalorder %s65_s16, %s65_s16 }
  0x32   :  { %p620_p6 = scmp.ne.s32.totalorder %s65_s16, %s619_s0  ;;  %p625_p8 = scmp.lt.s32.totalorder %s619_s0, %s619_s0 }
  0x34   :  { %p626_p9 = por %p625_p8, %p624_p7 }
  0x36   :  { %p627_p10 = pnand %p626_p9, %p620_p6 }
  0x38   :  { %630 = shalt.err (!%p627_p10)
}
  0x39   :  { %67 = dma.hbm_to_vmem [thread:$0]  %s724_s4, 128, %s65_s16, [#allocation9]  }
  0x3a   :  { %651 = dma.done.wait [#allocation3], 128  }
  0x3b   :  { %652 = vsyncadd [#allocation3], 4294967168 }
  0x3c   :  { %653 = dma.done.wait [#allocation6], 3072  }
  0x3d   :  { %654 = vsyncadd [#allocation6], 4294964224 }
  0x3e   :  { %655 = dma.done.wait [#allocation9], 256  }
  0x3f   :  { %656 = vsyncadd [#allocation9], 4294967040  ;;  %v668_v0 = vmov 0   ;;  %v495_v1 = vld [vmem:[#allocation5 + $0x74] ss:$8 sps:$4 sm:$0xff]   ;;  %v669_v20 = vmov 0.0   ;;  %v255_v49 = vlaneseq }
  0x40   :  { %214 = vmatprep.mubr.bf16.mxu0 %v668_v0  ;;  %v497_v2 = vld [vmem:[#allocation5 + $0x70] ss:$8 sps:$4 sm:$0xff]   ;;  %182 = vmatprep.subr.bf16.mxu0 %v495_v1  ;;  %v498_v3 = vld [vmem:[#allocation5 + $0x64] ss:$8 sps:$4 sm:$0xff]   ;;  %v500_v4 = vld [vmem:[#allocation5 + $0x60] ss:$8 sps:$4 sm:$0xff]  }
  0x41   :  { %183 = vmatpush1.bf16.msra.mxu0 %v497_v2  ;;  %v501_v5 = vld [vmem:[#allocation5 + $0x54] ss:$8 sps:$4 sm:$0xff]   ;;  %v503_v6 = vld [vmem:[#allocation5 + $0x50] ss:$8 sps:$4 sm:$0xff]   ;;  %v504_v7 = vld [vmem:[#allocation5 + $0x44] ss:$8 sps:$4 sm:$0xff]   ;;  %462 = vmatprep.subr.bf16.mxu1 %v669_v20 }
  0x42   :  { %184 = vmatprep.subr.bf16.mxu0 %v498_v3  ;;  %v506_v8 = vld [vmem:[#allocation5 + $0x40] ss:$8 sps:$4 sm:$0xff]   ;;  %v507_v9 = vld [vmem:[#allocation5 + $0x34] ss:$8 sps:$4 sm:$0xff]   ;;  %v509_v10 = vld [vmem:[#allocation5 + $0x30] ss:$8 sps:$4 sm:$0xff]  }
  0x43   :  { %v510_v11 = vld [vmem:[#allocation5 + $0x24] ss:$8 sps:$4 sm:$0xff]   ;;  %v512_v12 = vld [vmem:[#allocation5 + $0x20] ss:$8 sps:$4 sm:$0xff]   ;;  %v513_v13 = vld [vmem:[#allocation5 + $0x14] ss:$8 sps:$4 sm:$0xff]  }
  0x44   :  { %v515_v14 = vld [vmem:[#allocation5 + $0x10] ss:$8 sps:$4 sm:$0xff]   ;;  %v516_v15 = vld [vmem:[#allocation5 + $0x4] ss:$8 sps:$4 sm:$0xff]   ;;  %v518_v16 = vld [vmem:[#allocation5] ss:$8 sps:$4 sm:$0xff]  }
  0x45   :  { %185 = vmatpush1.bf16.msra.mxu0 %v500_v4  ;;  %v84_v17 = vld [vmem:[#allocation2] sm:$0xff]  ;;  %v520_v21 = vld [vmem:[#allocation7 + $0x30] sm:$0xff]   ;;  %v521_v22 = vld [vmem:[#allocation7 + $0x28] sm:$0xff]   ;;  %vm670_vm0 = vmmov 0   ;;  %v256_v50 = vshrl.u32 %v255_v49, 7  ;;  %s671_s2 = smov [#allocation11]  }
  0x46   :  { %186 = vmatprep.subr.bf16.mxu0 %v501_v5  ;;  %v85_v18 = vpack.c.bf16 %v84_v17, %v84_v17  ;;  %v519_v19 = vld [vmem:[#allocation7 + $0x38] sm:$0xff]   ;;  %v522_v23 = vld [vmem:[#allocation7 + $0x20] sm:$0xff]   ;;  %v524_v25 = vld [vmem:[#allocation7 + $0x10] sm:$0xff]   ;;  %478 = vmatprep.mubr.msk.bf16.mxu1 %vm670_vm0, %v669_v20  ;;  %s417_s4 = sshll.u32 %s671_s2, 4  ;;  %s418_s4 = int_to_ptr.vmem [resolvable:$true] %s417_s4 }
  0x47   :  { %463 = vmatpush3.bf16.msra.mxu1 %v519_v19  ;;  %v523_v24 = vld [vmem:[#allocation7 + $0x18] sm:$0xff]   ;;  %v525_v26 = vld [vmem:[#allocation7 + $0x8] sm:$0xff]   ;;  %v526_v27 = vld [vmem:[#allocation7] sm:$0xff]   ;;  %v257_v52 = vsub.s32 0, %v256_v50  ;;  %s631_s19 = scalar_lea.vmem %s418_s4, 128  ;;  %p636_p12 = scmp.lt.s32.totalorder %s418_s4, %s418_s4 }
  0x48   :  { %464 = vmatprep.subr.bf16.mxu1 %v669_v20  ;;  %v248_v51 = vld [vmem:[#allocation8] sm:$0x1]  ;;  %v252_v55 = vld [vmem:[#allocation8 + $0x1] sm:$0x1]  ;;  %p632_p11 = scmp.ne.s32.totalorder %s418_s4, %s631_s19  ;;  %p637_p13 = scmp.lt.s32.totalorder %s631_s19, %s631_s19 }
  0x49   :  { %187 = vmatpush1.bf16.msra.mxu0 %v503_v6 }
  0x4a   :  { %188 = vmatprep.subr.bf16.mxu0 %v504_v7  ;;  %p638_p0 = por %p637_p13, %p636_p12 }
  0x4b   :  { %465 = vmatpush3.bf16.msra.mxu1 %v520_v21 }
  0x4c   :  { %466 = vmatprep.subr.bf16.mxu1 %v669_v20  ;;  %p639_p1 = pnand %p638_p0, %p632_p11 }
  0x4d   :  { %189 = vmatpush1.bf16.msra.mxu0 %v506_v8 }
  0x4e   :  { %190 = vmatprep.subr.bf16.mxu0 %v507_v9 }
  0x4f   :  { %467 = vmatpush3.bf16.msra.mxu1 %v521_v22  ;;  %v444_v22 = vld [vmem:[#allocation10 + $0x2] ss:$0 sm:$0xff] }
  0x50   :  { %468 = vmatprep.subr.bf16.mxu1 %v669_v20 }
  0x51   :  { %191 = vmatpush1.bf16.msra.mxu0 %v509_v10 }
  0x52   :  { %192 = vmatprep.subr.bf16.mxu0 %v510_v11 }
  0x53   :  { %469 = vmatpush3.bf16.msra.mxu1 %v522_v23 }
  0x54   :  { %470 = vmatprep.subr.bf16.mxu1 %v669_v20 }
  0x55   :  { %193 = vmatpush1.bf16.msra.mxu0 %v512_v12 }
  0x56   :  { %194 = vmatprep.subr.bf16.mxu0 %v513_v13 }
  0x57   :  { %471 = vmatpush3.bf16.msra.mxu1 %v523_v24  ;;  %v389_v24 = vld [vmem:[#allocation10] sm:$0x1] }
  0x58   :  { %472 = vmatprep.subr.bf16.mxu1 %v669_v20 }
  0x59   :  { %195 = vmatpush1.bf16.msra.mxu0 %v515_v14 }
  0x5a   :  { %196 = vmatprep.subr.bf16.mxu0 %v516_v15 }
  0x5b   :  { %473 = vmatpush3.bf16.msra.mxu1 %v524_v25 }
  0x5c   :  { %474 = vmatprep.subr.bf16.mxu1 %v669_v20 }
  0x5d   :  { %197 = vmatpush1.bf16.msra.mxu0 %v518_v16 }
  0x5f   :  { %475 = vmatpush3.bf16.msra.mxu1 %v525_v26 }
  0x60   :  { %215 = vmatmul.mubr.bf16.vlgmr.msra.gmra.mxu0 %v85_v18  ;;  %476 = vmatprep.subr.bf16.mxu1 %v669_v20 }
  0x63   :  { %477 = vmatpush3.bf16.msra.mxu1 %v526_v27 }
 0x120   :  { %v216_v28 = vpop.f32.mrf.mxu0 }
 0x121   :  { %v232_v29 = vrot.slane %v216_v28, 4 }
 0x122   :  { %v218_v30 = vpop.f32.mrf.mxu0 }
 0x123   :  { %v233_v31 = vadd.f32 %v232_v29, %v216_v28  ;;  %v228_v23 = vadd.f32 %v444_v22, %v218_v30 }
 0x124   :  { %v220_v32 = vpop.f32.mrf.mxu0 }
 0x125   :  { %v234_v33 = vrot.slane %v233_v31, 2  ;;  %v230_v27 = vmul.f32 0.2, %v228_v23  ;;  %vm229_vm2 = vcmp.gt.f32.partialorder %v228_v23, 0.0 }
 0x126   :  { %v221_v34 = vpop.f32.mrf.mxu0 }
 0x127   :  { %v235_v35 = vadd.f32 %v234_v33, %v233_v31  ;;  %v231_v34 = vsel %vm229_vm2, %v228_v23, %v230_v27 }
 0x129   :  { %v236_v36 = vrot.slane %v235_v35, 1 }
 0x12b   :  { %v237_v37 = vadd.f32 %v236_v36, %v235_v35 }
 0x12d   :  { %v238_v38 = vmul.f32 0.125, %v237_v37 }
 0x12f   :  { %v239_v39 = vsub.f32 %v216_v28, %v238_v38 }
 0x131   :  { %v240_v40 = vmul.f32 %v239_v39, %v239_v39 }
 0x133   :  { %v241_v41 = vrot.slane %v240_v40, 4 }
 0x135   :  { %v242_v42 = vadd.f32 %v241_v41, %v240_v40 }
 0x137   :  { %v243_v43 = vrot.slane %v242_v42, 2 }
 0x139   :  { %v244_v44 = vadd.f32 %v243_v43, %v242_v42 }
 0x13b   :  { %v245_v45 = vrot.slane %v244_v44, 1 }
 0x13d   :  { %v246_v46 = vadd.f32 %v245_v45, %v244_v44 }
 0x13f   :  { %v247_v47 = vmul.f32 0.125, %v246_v46 }
 0x141   :  { %v249_v48 = vadd.f32 1e-05, %v247_v47 }
 0x143   :  { %527 = vrsqrt.f32 %v249_v48 }
 0x150   :  { %v528_v53 = vpop.eup %527 }
 0x151   :  { %v251_v54 = vmul.f32 %v528_v53, %v248_v51 }
 0x153   :  { %v253_v56 = vmul.f32 %v251_v54, %v238_v38  ;;  %v258_v57 = vrot.slane %v251_v54, %v257_v52 }
 0x155   :  { %v254_v58 = vsub.f32 %v252_v55, %v253_v56  ;;  %v259_v59 = vmul.f32 %v258_v57, %v216_v28  ;;  %v393_v28 = vld [vmem:[#allocation10 + $0x1] sm:$0x1] }
 0x157   :  { %v263_v60 = vrot.slane %v254_v58, %v257_v52 }
 0x159   :  { %v264_v61 = vadd.f32 %v263_v60, %v259_v59 }
 0x15b   :  { %vm265_vm1 = vcmp.gt.f32.partialorder %v264_v61, 0.0  ;;  %v266_v62 = vmul.f32 0.2, %v264_v61 }
 0x15d   :  { %v267_v63 = vsel %vm265_vm1, %v264_v61, %v266_v62 }
 0x15e   :  { %v268_v0 = vpack.c.bf16 %v267_v63, %v267_v63 }
 0x160   :  { %479 = vmatmul.mubr.bf16.vlgmr.msra.gmra.mxu1 %v268_v0 }
 0x220   :  { %v367_v1 = vpop.f32.mrf.mxu1 }
 0x221   :  { %v373_v2 = vrot.slane %v367_v1, 4 }
 0x222   :  { %v480_v3 = vpop.f32.mrf.mxu1 }
 0x223   :  { %v374_v4 = vadd.f32 %v373_v2, %v367_v1 }
 0x224   :  { %v370_v5 = vpop.f32.mrf.mxu1 }
 0x225   :  { %v375_v6 = vrot.slane %v374_v4, 2 }
 0x226   :  { %v481_v7 = vpop.f32.mrf.mxu1 }
 0x227   :  { %v376_v8 = vadd.f32 %v375_v6, %v374_v4 }
 0x229   :  { %v377_v9 = vrot.slane %v376_v8, 1 }
 0x22b   :  { %v378_v10 = vadd.f32 %v377_v9, %v376_v8 }
 0x22d   :  { %v379_v11 = vmul.f32 0.125, %v378_v10 }
 0x22f   :  { %v380_v12 = vsub.f32 %v367_v1, %v379_v11 }
 0x231   :  { %v381_v13 = vmul.f32 %v380_v12, %v380_v12 }
 0x233   :  { %v382_v14 = vrot.slane %v381_v13, 4 }
 0x235   :  { %v383_v15 = vadd.f32 %v382_v14, %v381_v13 }
 0x237   :  { %v384_v16 = vrot.slane %v383_v15, 2 }
 0x239   :  { %v385_v17 = vadd.f32 %v384_v16, %v383_v15 }
 0x23b   :  { %v386_v18 = vrot.slane %v385_v17, 1 }
 0x23d   :  { %v387_v19 = vadd.f32 %v386_v18, %v385_v17 }
 0x23f   :  { %v388_v20 = vmul.f32 0.125, %v387_v19 }
 0x241   :  { %v390_v21 = vadd.f32 1e-05, %v388_v20 }
 0x243   :  { %529 = vrsqrt.f32 %v390_v21 }
 0x250   :  { %v530_v25 = vpop.eup %529 }
 0x251   :  { %v392_v26 = vmul.f32 %v530_v25, %v389_v24 }
 0x253   :  { %v394_v29 = vmul.f32 %v392_v26, %v379_v11  ;;  %v399_v31 = vrot.slane %v392_v26, %v257_v52 }
 0x255   :  { %v400_v32 = vmul.f32 %v399_v31, %v367_v1  ;;  %v395_v33 = vsub.f32 %v393_v28, %v394_v29 }
 0x257   :  { %v401_v35 = vadd.f32 %v400_v32, %v231_v34  ;;  %v405_v36 = vrot.slane %v395_v33, %v257_v52 }
 0x259   :  { %v406_v37 = vadd.f32 %v405_v36, %v401_v35 }
 0x25b   :  { %vm407_vm3 = vcmp.gt.f32.partialorder %v406_v37, 0.0  ;;  %v408_v38 = vmul.f32 0.2, %v406_v37 }
 0x25d   :  { %v409_v30 = vsel %vm407_vm3, %v406_v37, %v408_v38 }
 0x25e   :  { %410 = vst [vmem:[#allocation11] sm:$0xff] %v409_v30 }
 0x25f   :  { %642 = shalt.err (!%p639_p1)
}
 0x260   :  { %420 = dma.vmem_to_hbm [thread:$0]  %s418_s4, 128, %s725_s5, [#allocation4]  }
 0x261   :  { %657 = dma.done.wait [#allocation4], 128  }
 0x262   :  { %658 = vsyncadd [#allocation4], 4294967168 }
 0x263   :  { %424 = vsyncpa [#allocation3], 1 }
 0x264   :  { %425 = vsyncpa [#allocation6], 1 }
 0x265   :  { %426 = vsyncpa [#allocation9], 1 }
 0x266   :  { %427 = vsyncpa [#allocation4], 1 }

// kernel: tpu_custom_call.1
= control target key start
LH: loop header
LB: loop body
LE: loop exit
PB: predicated region body
PF: predicated region fallthrough
CT: control target
= control target key end

     0   :  { %10 = vsyncpa [#allocation3], 0  ;;  %s720_s0 = inlined_call_operand.hbm [shape: f32[8,128], index: 0, kind: input, shape index: {}]   ;;  %s721_s1 = inlined_call_operand.hbm [shape: bf16[128,256], index: 1, kind: input, shape index: {}]   ;;  %s722_s2 = inlined_call_operand.hbm [shape: bf16[128,128], index: 2, kind: input, shape index: {}]   ;;  %s723_s3 = inlined_call_operand.hbm [shape: f32[8,128], index: 3, kind: input, shape index: {}]   ;;  %s724_s4 = inlined_call_operand.hbm [shape: f32[8,128], index: 4, kind: input, shape index: {}]   ;;  %s725_s5 = inlined_call_operand.hbm [shape: f32[8,128], index: 5, kind: output, shape index: {}]  }
   0x1   :  { %11 = vsyncpa [#allocation6], 0 }
   0x2   :  { %12 = vsyncpa [#allocation9], 0 }
   0x3   :  { %13 = vsyncpa [#allocation4], 0  ;;  %s659_s18 = smov [#allocation5]  }
   0x4   :  { %s29_s19 = sshll.u32 %s659_s18, 4  ;;  %s30_s19 = int_to_ptr.vmem [resolvable:$true] %s29_s19 }
   0x5   :  { %s539_s20 = scalar_lea.vmem %s30_s19, 2048  ;;  %p544_p1 = scmp.lt.s32.totalorder %s30_s19, %s30_s19 }
   0x6   :  { %p540_p0 = scmp.ne.s32.totalorder %s30_s19, %s539_s20  ;;  %p545_p2 = scmp.lt.s32.totalorder %s539_s20, %s539_s20 }
   0x8   :  { %p546_p3 = por %p545_p2, %p544_p1 }
   0xa   :  { %p547_p4 = pnand %p546_p3, %p540_p0 }
   0xc   :  { %550 = shalt.err (!%p547_p4)
}
   0xd   :  { %s660_s21 = smov 128   ;;  %s661_s22 = smov 8  }
   0xe   :  { %35 = dma.hbm_to_vmem [thread:$0]  %s721_s1, 2048, %s30_s19, [#allocation6], %s660_s21, %s660_s21, %s661_s22  }
   0xf   :  { %s662_s25 = smov [#allocation8]   ;;  %s663_s27 = smov [#allocation2]  }
  0x10   :  { %s54_s26 = sshll.u32 %s662_s25, 4  ;;  %s20_s28 = sshll.u32 %s663_s27, 4  ;;  %s55_s26 = int_to_ptr.vmem [resolvable:$true] %s54_s26  ;;  %s21_s28 = int_to_ptr.vmem [resolvable:$true] %s20_s28 }
  0x11   :  { %s559_s29 = scalar_lea.vmem %s55_s26, 128  ;;  %p564_p6 = scmp.lt.s32.totalorder %s55_s26, %s55_s26 }
  0x12   :  { %p560_p5 = scmp.ne.s32.totalorder %s55_s26, %s559_s29  ;;  %p565_p7 = scmp.lt.s32.totalorder %s559_s29, %s559_s29 }
  0x14   :  { %p566_p8 = por %p565_p7, %p564_p6 }
  0x16   :  { %p567_p9 = pnand %p566_p8, %p560_p5 }
  0x18   :  { %570 = shalt.err (!%p567_p9)
}
  0x19   :  { %57 = dma.hbm_to_vmem [thread:$0]  %s723_s3, 128, %s55_s26, [#allocation9]  }
  0x1a   :  { %s579_s7 = scalar_lea.vmem %s21_s28, 128  ;;  %p584_p11 = scmp.lt.s32.totalorder %s21_s28, %s21_s28 }
  0x1b   :  { %p580_p10 = scmp.ne.s32.totalorder %s21_s28, %s579_s7  ;;  %p585_p12 = scmp.lt.s32.totalorder %s579_s7, %s579_s7 }
  0x1d   :  { %p586_p13 = por %p585_p12, %p584_p11 }
  0x1f   :  { %p587_p0 = pnand %p586_p13, %p580_p10 }
  0x21   :  { %590 = shalt.err (!%p587_p0)
}
  0x22   :  { %23 = dma.hbm_to_vmem [thread:$0]  %s720_s0, 128, %s21_s28, [#allocation3]  }
  0x23   :  { %s664_s9 = smov [#allocation7]  }
  0x24   :  { %s41_s10 = sshll.u32 %s664_s9, 4  ;;  %s42_s10 = int_to_ptr.vmem [resolvable:$true] %s41_s10 }
  0x25   :  { %s599_s11 = scalar_lea.vmem %s42_s10, 1024  ;;  %p604_p2 = scmp.lt.s32.totalorder %s42_s10, %s42_s10 }
  0x26   :  { %p600_p1 = scmp.ne.s32.totalorder %s42_s10, %s599_s11  ;;  %p605_p3 = scmp.lt.s32.totalorder %s599_s11, %s599_s11 }
  0x28   :  { %p606_p4 = por %p605_p3, %p604_p2 }
  0x2a   :  { %p607_p5 = pnand %p606_p4, %p600_p1 }
  0x2c   :  { %610 = shalt.err (!%p607_p5)
}
  0x2d   :  { %s665_s3 = smov 64   ;;  %s666_s12 = smov 4  }
  0x2e   :  { %47 = dma.hbm_to_vmem [thread:$0]  %s722_s2, 1024, %s42_s10, [#allocation6], %s665_s3, %s665_s3, %s666_s12  }
  0x2f   :  { %s667_s15 = smov [#allocation10]  }
  0x30   :  { %s64_s16 = sshll.u32 %s667_s15, 4  ;;  %s65_s16 = int_to_ptr.vmem [resolvable:$true] %s64_s16 }
  0x31   :  { %s619_s0 = scalar_lea.vmem %s65_s16, 128  ;;  %p624_p7 = scmp.lt.s32.totalorder %s65_s16, %s65_s16 }
  0x32   :  { %p620_p6 = scmp.ne.s32.totalorder %s65_s16, %s619_s0  ;;  %p625_p8 = scmp.lt.s32.totalorder %s619_s0, %s619_s0 }
  0x34   :  { %p626_p9 = por %p625_p8, %p624_p7 }
  0x36   :  { %p627_p10 = pnand %p626_p9, %p620_p6 }
  0x38   :  { %630 = shalt.err (!%p627_p10)
}
  0x39   :  { %67 = dma.hbm_to_vmem [thread:$0]  %s724_s4, 128, %s65_s16, [#allocation9]  }
  0x3a   :  { %651 = dma.done.wait [#allocation3], 128  }
  0x3b   :  { %652 = vsyncadd [#allocation3], 4294967168 }
  0x3c   :  { %653 = dma.done.wait [#allocation6], 3072  }
  0x3d   :  { %654 = vsyncadd [#allocation6], 4294964224 }
  0x3e   :  { %655 = dma.done.wait [#allocation9], 256  }
  0x3f   :  { %656 = vsyncadd [#allocation9], 4294967040  ;;  %v668_v0 = vmov 0   ;;  %v495_v1 = vld [vmem:[#allocation5 + $0x74] ss:$8 sps:$4 sm:$0xff]   ;;  %v669_v20 = vmov 0.0   ;;  %v255_v49 = vlaneseq }
  0x40   :  { %214 = vmatprep.mubr.bf16.mxu0 %v668_v0  ;;  %v497_v2 = vld [vmem:[#allocation5 + $0x70] ss:$8 sps:$4 sm:$0xff]   ;;  %182 = vmatprep.subr.bf16.mxu0 %v495_v1  ;;  %v498_v3 = vld [vmem:[#allocation5 + $0x64] ss:$8 sps:$4 sm:$0xff]   ;;  %v500_v4 = vld [vmem:[#allocation5 + $0x60] ss:$8 sps:$4 sm:$0xff]  }
  0x41   :  { %183 = vmatpush1.bf16.msra.mxu0 %v497_v2  ;;  %v501_v5 = vld [vmem:[#allocation5 + $0x54] ss:$8 sps:$4 sm:$0xff]   ;;  %v503_v6 = vld [vmem:[#allocation5 + $0x50] ss:$8 sps:$4 sm:$0xff]   ;;  %v504_v7 = vld [vmem:[#allocation5 + $0x44] ss:$8 sps:$4 sm:$0xff]   ;;  %462 = vmatprep.subr.bf16.mxu1 %v669_v20 }
  0x42   :  { %184 = vmatprep.subr.bf16.mxu0 %v498_v3  ;;  %v506_v8 = vld [vmem:[#allocation5 + $0x40] ss:$8 sps:$4 sm:$0xff]   ;;  %v507_v9 = vld [vmem:[#allocation5 + $0x34] ss:$8 sps:$4 sm:$0xff]   ;;  %v509_v10 = vld [vmem:[#allocation5 + $0x30] ss:$8 sps:$4 sm:$0xff]  }
  0x43   :  { %v510_v11 = vld [vmem:[#allocation5 + $0x24] ss:$8 sps:$4 sm:$0xff]   ;;  %v512_v12 = vld [vmem:[#allocation5 + $0x20] ss:$8 sps:$4 sm:$0xff]   ;;  %v513_v13 = vld [vmem:[#allocation5 + $0x14] ss:$8 sps:$4 sm:$0xff]  }
  0x44   :  { %v515_v14 = vld [vmem:[#allocation5 + $0x10] ss:$8 sps:$4 sm:$0xff]   ;;  %v516_v15 = vld [vmem:[#allocation5 + $0x4] ss:$8 sps:$4 sm:$0xff]   ;;  %v518_v16 = vld [vmem:[#allocation5] ss:$8 sps:$4 sm:$0xff]  }
  0x45   :  { %185 = vmatpush1.bf16.msra.mxu0 %v500_v4  ;;  %v84_v17 = vld [vmem:[#allocation2] sm:$0xff]  ;;  %v520_v21 = vld [vmem:[#allocation7 + $0x30] sm:$0xff]   ;;  %v521_v22 = vld [vmem:[#allocation7 + $0x28] sm:$0xff]   ;;  %vm670_vm0 = vmmov 0   ;;  %v256_v50 = vshrl.u32 %v255_v49, 7  ;;  %s671_s2 = smov [#allocation11]  }
  0x46   :  { %186 = vmatprep.subr.bf16.mxu0 %v501_v5  ;;  %v85_v18 = vpack.c.bf16 %v84_v17, %v84_v17  ;;  %v519_v19 = vld [vmem:[#allocation7 + $0x38] sm:$0xff]   ;;  %v522_v23 = vld [vmem:[#allocation7 + $0x20] sm:$0xff]   ;;  %v524_v25 = vld [vmem:[#allocation7 + $0x10] sm:$0xff]   ;;  %478 = vmatprep.mubr.msk.bf16.mxu1 %vm670_vm0, %v669_v20  ;;  %s417_s4 = sshll.u32 %s671_s2, 4  ;;  %s418_s4 = int_to_ptr.vmem [resolvable:$true] %s417_s4 }
  0x47   :  { %463 = vmatpush3.bf16.msra.mxu1 %v519_v19  ;;  %v523_v24 = vld [vmem:[#allocation7 + $0x18] sm:$0xff]   ;;  %v525_v26 = vld [vmem:[#allocation7 + $0x8] sm:$0xff]   ;;  %v526_v27 = vld [vmem:[#allocation7] sm:$0xff]   ;;  %v257_v52 = vsub.s32 0, %v256_v50  ;;  %s631_s19 = scalar_lea.vmem %s418_s4, 128  ;;  %p636_p12 = scmp.lt.s32.totalorder %s418_s4, %s418_s4 }
  0x48   :  { %464 = vmatprep.subr.bf16.mxu1 %v669_v20  ;;  %v248_v51 = vld [vmem:[#allocation8] sm:$0x1]  ;;  %v252_v55 = vld [vmem:[#allocation8 + $0x1] sm:$0x1]  ;;  %p632_p11 = scmp.ne.s32.totalorder %s418_s4, %s631_s19  ;;  %p637_p13 = scmp.lt.s32.totalorder %s631_s19, %s631_s19 }
  0x49   :  { %187 = vmatpush1.bf16.msra.mxu0 %v503_v6 }
  0x4a   :  { %188 = vmatprep.subr.bf16.mxu0 %v504_v7  ;;  %p638_p0 = por %p637_p13, %p636_p12 }
  0x4b   :  { %465 = vmatpush3.bf16.msra.mxu1 %v520_v21 }
  0x4c   :  { %466 = vmatprep.subr.bf16.mxu1 %v669_v20  ;;  %p639_p1 = pnand %p638_p0, %p632_p11 }
  0x4d   :  { %189 = vmatpush1.bf16.msra.mxu0 %v506_v8 }
  0x4e   :  { %190 = vmatprep.subr.bf16.mxu0 %v507_v9 }
  0x4f   :  { %467 = vmatpush3.bf16.msra.mxu1 %v521_v22  ;;  %v444_v22 = vld [vmem:[#allocation10 + $0x2] ss:$0 sm:$0xff] }
  0x50   :  { %468 = vmatprep.subr.bf16.mxu1 %v669_v20 }
  0x51   :  { %191 = vmatpush1.bf16.msra.mxu0 %v509_v10 }
  0x52   :  { %192 = vmatprep.subr.bf16.mxu0 %v510_v11 }
  0x53   :  { %469 = vmatpush3.bf16.msra.mxu1 %v522_v23 }
  0x54   :  { %470 = vmatprep.subr.bf16.mxu1 %v669_v20 }
  0x55   :  { %193 = vmatpush1.bf16.msra.mxu0 %v512_v12 }
  0x56   :  { %194 = vmatprep.subr.bf16.mxu0 %v513_v13 }
  0x57   :  { %471 = vmatpush3.bf16.msra.mxu1 %v523_v24  ;;  %v389_v24 = vld [vmem:[#allocation10] sm:$0x1] }
  0x58   :  { %472 = vmatprep.subr.bf16.mxu1 %v669_v20 }
  0x59   :  { %195 = vmatpush1.bf16.msra.mxu0 %v515_v14 }
  0x5a   :  { %196 = vmatprep.subr.bf16.mxu0 %v516_v15 }
  0x5b   :  { %473 = vmatpush3.bf16.msra.mxu1 %v524_v25 }
  0x5c   :  { %474 = vmatprep.subr.bf16.mxu1 %v669_v20 }
  0x5d   :  { %197 = vmatpush1.bf16.msra.mxu0 %v518_v16 }
  0x5f   :  { %475 = vmatpush3.bf16.msra.mxu1 %v525_v26 }
  0x60   :  { %215 = vmatmul.mubr.bf16.vlgmr.msra.gmra.mxu0 %v85_v18  ;;  %476 = vmatprep.subr.bf16.mxu1 %v669_v20 }
  0x63   :  { %477 = vmatpush3.bf16.msra.mxu1 %v526_v27 }
 0x120   :  { %v216_v28 = vpop.f32.mrf.mxu0 }
 0x121   :  { %v232_v29 = vrot.slane %v216_v28, 4 }
 0x122   :  { %v218_v30 = vpop.f32.mrf.mxu0 }
 0x123   :  { %v233_v31 = vadd.f32 %v232_v29, %v216_v28  ;;  %v228_v23 = vadd.f32 %v444_v22, %v218_v30 }
 0x124   :  { %v220_v32 = vpop.f32.mrf.mxu0 }
 0x125   :  { %v234_v33 = vrot.slane %v233_v31, 2  ;;  %v230_v27 = vmul.f32 0.2, %v228_v23  ;;  %vm229_vm2 = vcmp.gt.f32.partialorder %v228_v23, 0.0 }
 0x126   :  { %v221_v34 = vpop.f32.mrf.mxu0 }
 0x127   :  { %v235_v35 = vadd.f32 %v234_v33, %v233_v31  ;;  %v231_v34 = vsel %vm229_vm2, %v228_v23, %v230_v27 }
 0x129   :  { %v236_v36 = vrot.slane %v235_v35, 1 }
 0x12b   :  { %v237_v37 = vadd.f32 %v236_v36, %v235_v35 }
 0x12d   :  { %v238_v38 = vmul.f32 0.125, %v237_v37 }
 0x12f   :  { %v239_v39 = vsub.f32 %v216_v28, %v238_v38 }
 0x131   :  { %v240_v40 = vmul.f32 %v239_v39, %v239_v39 }
 0x133   :  { %v241_v41 = vrot.slane %v240_v40, 4 }
 0x135   :  { %v242_v42 = vadd.f32 %v241_v41, %v240_v40 }
 0x137   :  { %v243_v43 = vrot.slane %v242_v42, 2 }
 0x139   :  { %v244_v44 = vadd.f32 %v243_v43, %v242_v42 }
 0x13b   :  { %v245_v45 = vrot.slane %v244_v44, 1 }
 0x13d   :  { %v246_v46 = vadd.f32 %v245_v45, %v244_v44 }
 0x13f   :  { %v247_v47 = vmul.f32 0.125, %v246_v46 }
 0x141   :  { %v249_v48 = vadd.f32 1e-05, %v247_v47 }
 0x143   :  { %527 = vrsqrt.f32 %v249_v48 }
 0x150   :  { %v528_v53 = vpop.eup %527 }
 0x151   :  { %v251_v54 = vmul.f32 %v528_v53, %v248_v51 }
 0x153   :  { %v253_v56 = vmul.f32 %v251_v54, %v238_v38  ;;  %v258_v57 = vrot.slane %v251_v54, %v257_v52 }
 0x155   :  { %v254_v58 = vsub.f32 %v252_v55, %v253_v56  ;;  %v259_v59 = vmul.f32 %v258_v57, %v216_v28  ;;  %v393_v28 = vld [vmem:[#allocation10 + $0x1] sm:$0x1] }
 0x157   :  { %v263_v60 = vrot.slane %v254_v58, %v257_v52 }
 0x159   :  { %v264_v61 = vadd.f32 %v263_v60, %v259_v59 }
 0x15b   :  { %vm265_vm1 = vcmp.gt.f32.partialorder %v264_v61, 0.0  ;;  %v266_v62 = vmul.f32 0.2, %v264_v61 }
 0x15d   :  { %v267_v63 = vsel %vm265_vm1, %v264_v61, %v266_v62 }
 0x15e   :  { %v268_v0 = vpack.c.bf16 %v267_v63, %v267_v63 }
 0x160   :  { %479 = vmatmul.mubr.bf16.vlgmr.msra.gmra.mxu1 %v268_v0 }
 0x220   :  { %v367_v1 = vpop.f32.mrf.mxu1 }
 0x221   :  { %v373_v2 = vrot.slane %v367_v1, 4 }
 0x222   :  { %v480_v3 = vpop.f32.mrf.mxu1 }
 0x223   :  { %v374_v4 = vadd.f32 %v373_v2, %v367_v1 }
 0x224   :  { %v370_v5 = vpop.f32.mrf.mxu1 }
 0x225   :  { %v375_v6 = vrot.slane %v374_v4, 2 }
 0x226   :  { %v481_v7 = vpop.f32.mrf.mxu1 }
 0x227   :  { %v376_v8 = vadd.f32 %v375_v6, %v374_v4 }
 0x229   :  { %v377_v9 = vrot.slane %v376_v8, 1 }
 0x22b   :  { %v378_v10 = vadd.f32 %v377_v9, %v376_v8 }
 0x22d   :  { %v379_v11 = vmul.f32 0.125, %v378_v10 }
 0x22f   :  { %v380_v12 = vsub.f32 %v367_v1, %v379_v11 }
 0x231   :  { %v381_v13 = vmul.f32 %v380_v12, %v380_v12 }
 0x233   :  { %v382_v14 = vrot.slane %v381_v13, 4 }
 0x235   :  { %v383_v15 = vadd.f32 %v382_v14, %v381_v13 }
 0x237   :  { %v384_v16 = vrot.slane %v383_v15, 2 }
 0x239   :  { %v385_v17 = vadd.f32 %v384_v16, %v383_v15 }
 0x23b   :  { %v386_v18 = vrot.slane %v385_v17, 1 }
 0x23d   :  { %v387_v19 = vadd.f32 %v386_v18, %v385_v17 }
 0x23f   :  { %v388_v20 = vmul.f32 0.125, %v387_v19 }
 0x241   :  { %v390_v21 = vadd.f32 1e-05, %v388_v20 }
 0x243   :  { %529 = vrsqrt.f32 %v390_v21 }
 0x250   :  { %v530_v25 = vpop.eup %529 }
 0x251   :  { %v392_v26 = vmul.f32 %v530_v25, %v389_v24 }
 0x253   :  { %v394_v29 = vmul.f32 %v392_v26, %v379_v11  ;;  %v399_v31 = vrot.slane %v392_v26, %v257_v52 }
 0x255   :  { %v400_v32 = vmul.f32 %v399_v31, %v367_v1  ;;  %v395_v33 = vsub.f32 %v393_v28, %v394_v29 }
 0x257   :  { %v401_v35 = vadd.f32 %v400_v32, %v231_v34  ;;  %v405_v36 = vrot.slane %v395_v33, %v257_v52 }
 0x259   :  { %v406_v37 = vadd.f32 %v405_v36, %v401_v35 }
 0x25b   :  { %vm407_vm3 = vcmp.gt.f32.partialorder %v406_v37, 0.0  ;;  %v408_v38 = vmul.f32 0.2, %v406_v37 }
 0x25d   :  { %v409_v30 = vsel %vm407_vm3, %v406_v37, %v408_v38 }
 0x25e   :  { %410 = vst [vmem:[#allocation11] sm:$0xff] %v409_v30 }
 0x25f   :  { %642 = shalt.err (!%p639_p1)
}
 0x260   :  { %420 = dma.vmem_to_hbm [thread:$0]  %s418_s4, 128, %s725_s5, [#allocation4]  }
 0x261   :  { %657 = dma.done.wait [#allocation4], 128  }
 0x262   :  { %658 = vsyncadd [#allocation4], 4294967168 }
 0x263   :  { %424 = vsyncpa [#allocation3], 1 }
 0x264   :  { %425 = vsyncpa [#allocation6], 1 }
 0x265   :  { %426 = vsyncpa [#allocation9], 1 }
 0x266   :  { %427 = vsyncpa [#allocation4], 1 }

</bundles_post_ra>
